<compile_context>
chip_gen: v5e
topology: v5e:2x2
jax: 0.10.0
libtpu: 0.0.40
codegen_flags: <defaults>
</compile_context>

<pallas_src>
import math
import functools

import numpy as np
import jax
import jax.numpy as jnp
from jax.experimental import pallas as pl
from jax.experimental.pallas import tpu as pltpu


def _round_up(x, m):
    return (x + m - 1) // m * m


def aam_softmax_kernel(xn_ref, wt_ref, lab_ref, phi_ref, o_ref, *, s):
    # xn_ref : (TB, D)  bf16     pre-L2-normalized input rows
    # wt_ref : (D, TC)  bf16     pre-L2-normalized weights, transposed
    # lab_ref: (TB, 1)  i32      class label per row
    # phi_ref: (TB, 1)  f32      precomputed cos(theta_yi + m) (with threshold)
    # o_ref  : (TB, TC) f32/bf16 scaled logits tile
    cosine = jnp.dot(xn_ref[...], wt_ref[...],
                     preferred_element_type=jnp.float32)          # MXU, (TB, TC)
    tb, tc = cosine.shape
    # Global class index of each lane in this class tile.
    col = jax.lax.broadcasted_iota(jnp.int32, (tb, tc), 1) + pl.program_id(1) * tc
    mask = col == lab_ref[...]                                    # <=1 True per row
    # Single vselect + scale over the tile.
    o_ref[...] = (jnp.where(mask, phi_ref[...], cosine) * s).astype(o_ref.dtype)


def aam_softmax(x, weight, label, *, s=30.0, m=0.5, easy_margin=False,
                tb=512, tc=1024, compute_dtype=jnp.bfloat16,
                out_dtype=jnp.float32):
    """x: (B, in_features); weight: (out_features, in_features); label: (B,) int.
    Returns (B, out_features) scaled logits matching the PyTorch module forward."""
    B, D = x.shape
    C, D2 = weight.shape
    assert D == D2

    # ---- Hoisted normalization / cast (done once, fused by XLA). --------------
    # F.normalize(v, dim=1, eps=1e-12) == v * rsqrt(max(|v|^2, eps^2))
    x32 = x.astype(jnp.float32)
    xn = x32 * jax.lax.rsqrt(jnp.maximum(jnp.sum(x32 * x32, axis=-1, keepdims=True),
                                         1e-24))
    w32 = weight.astype(jnp.float32)
    wn = w32 * jax.lax.rsqrt(jnp.maximum(jnp.sum(w32 * w32, axis=-1, keepdims=True),
                                         1e-24))
    xn_c = xn.astype(compute_dtype)            # (B, D)
    wn_c = wn.astype(compute_dtype)            # (C, D)
    wt_c = wn_c.T                              # (D, C): K-on-sublane, N-on-lane

    lab = label.astype(jnp.int32)

    # ---- Per-row target cosine + margin, precomputed outside the grid. --------
    # Same compute-dtype rounding as the kernel matmul (products exact in f32).
    w_yi = jnp.take(wn_c, lab, axis=0)                                   # (B, D)
    cos_yi = jnp.sum(xn_c.astype(jnp.float32) * w_yi.astype(jnp.float32),
                     axis=-1, keepdims=True)                             # (B, 1)
    sin_yi = jnp.sqrt(jnp.clip(1.0 - cos_yi * cos_yi, 0.0, 1.0))
    cos_m, sin_m = math.cos(m), math.sin(m)
    th, mm = math.cos(math.pi - m), math.sin(math.pi - m) * m
    phi = cos_yi * cos_m - sin_yi * sin_m
    if easy_margin:
        phi = jnp.where(cos_yi > 0.0, phi, cos_yi)
    else:
        phi = jnp.where(cos_yi > th, phi, cos_yi - mm)
    phi = phi.astype(jnp.float32)

    # ---- Tile sizes. -----------------------------------------------------------
    # tb: multiple of 16 (bf16 sublane packing). tc: multiple of 128 that divides
    # round_up(C, 128), so output padding is <128 columns (near-free final slice).
    tb = max(16, min(_round_up(tb, 16), _round_up(B, 16)))
    Bp = _round_up(B, tb)
    Cp = _round_up(C, 128)
    tc = max(128, min((tc // 128) * 128, Cp))
    while Cp % tc != 0:
        tc -= 128

    xn_p = jnp.pad(xn_c, ((0, Bp - B), (0, 0))) if Bp != B else xn_c
    wt_p = jnp.pad(wt_c, ((0, 0), (0, Cp - C))) if Cp != C else wt_c
    lab_p = jnp.pad(lab, (0, Bp - B)) if Bp != B else lab
    phi_p = jnp.pad(phi, ((0, Bp - B), (0, 0))) if Bp != B else phi
    lab2d = lab_p.reshape(Bp, 1)

    grid = (Bp // tb, Cp // tc)

    # ---- VMEM budget. ----------------------------------------------------------
    # Double-buffered pipelined I/O tiles (labels/phi pad their last dim to 128
    # lanes) plus compiler-managed f32 matmul-result / select intermediates.
    cbytes = np.dtype(compute_dtype).itemsize
    obytes = np.dtype(out_dtype).itemsize
    io = 2 * (tb * D * cbytes + D * tc * cbytes + tb * tc * obytes
              + 2 * tb * 128 * 4)
    scratch = 2 * tb * tc * 4
    try:
        phys_vmem = int(pltpu.get_tpu_info().vmem_capacity_bytes)
    except Exception:
        phys_vmem = 64 << 20                      # conservative (v7x per-core VMEM)
    vmem_cap = max(32 << 20, min(phys_vmem - (24 << 20), 96 << 20))
    vmem_limit = int(min(max(int(1.25 * (io + scratch)), 16 << 20), vmem_cap))

    out = pl.pallas_call(
        functools.partial(aam_softmax_kernel, s=float(s)),
        out_shape=jax.ShapeDtypeStruct((Bp, Cp), out_dtype),
        grid=grid,
        in_specs=[
            pl.BlockSpec((tb, D), lambda i, j: (i, 0)),   # normalized x rows (bf16)
            pl.BlockSpec((D, tc), lambda i, j: (0, j)),   # normalized W^T cols (bf16)
            pl.BlockSpec((tb, 1), lambda i, j: (i, 0)),   # labels
            pl.BlockSpec((tb, 1), lambda i, j: (i, 0)),   # precomputed phi rows
        ],
        out_specs=pl.BlockSpec((tb, tc), lambda i, j: (i, j)),
        compiler_params=pltpu.CompilerParams(
            dimension_semantics=("parallel", "parallel"),
            vmem_limit_bytes=vmem_limit,
        ),
    )(xn_p, wt_p, lab2d, phi_p)

    if Bp != B or Cp != C:
        out = out[:B, :C]
    return out


def xavier_uniform(key, shape):
    # matches nn.init.xavier_uniform_ for a 2-D (out, in) weight, gain=1
    fan_out, fan_in = shape
    bound = math.sqrt(6.0 / (fan_in + fan_out))
    return jax.random.uniform(key, shape, jnp.float32, -bound, bound)


def aam_softmax_ref(x, weight, label, *, s=30.0, m=0.5, easy_margin=False,
                    matmul_dtype=jnp.float32):
    # pure-JAX reference (PyTorch semantics); matmul_dtype lets us build a
    # bf16-rounding-consistent reference for a tight check of the kernel logic.
    x = x.astype(jnp.float32)
    w = weight.astype(jnp.float32)
    xn = x * jax.lax.rsqrt(jnp.maximum(jnp.sum(x * x, axis=1, keepdims=True), 1e-24))
    wn = w * jax.lax.rsqrt(jnp.maximum(jnp.sum(w * w, axis=1, keepdims=True), 1e-24))
    cosine = jnp.dot(xn.astype(matmul_dtype), wn.astype(matmul_dtype).T,
                     preferred_element_type=jnp.float32)
    sine = jnp.sqrt(jnp.clip(1.0 - cosine ** 2, 0.0, 1.0))
    phi = cosine * math.cos(m) - sine * math.sin(m)
    if easy_margin:
        phi = jnp.where(cosine > 0, phi, cosine)
    else:
        phi = jnp.where(cosine > math.cos(math.pi - m),
                        phi, cosine - math.sin(math.pi - m) * m)
    one_hot = jax.nn.one_hot(label, weight.shape[0], dtype=jnp.float32)
    return (one_hot * phi + (1.0 - one_hot) * cosine) * s


if __name__ == "__main__":
    # TODO(synk): the PyTorch device_id multi-GPU chunking path (torch.chunk +
    # per-device .cuda + cat) is a data-placement detail with no single-device
    # TPU equivalent; the math is identical to the device_id=None path.
    B, in_features, out_features = 32, 128, 512

    key = jax.random.PRNGKey(0)
    kx, kw, kl = jax.random.split(key, 3)
    x = jax.random.normal(kx, (B, in_features), jnp.float32)
    weight = xavier_uniform(kw, (out_features, in_features))
    label = jax.random.randint(kl, (B,), 0, out_features, jnp.int32)

    # Small tiles so the demo exercises a real (2, 4) grid / pipeline.
    out = aam_softmax(x, weight, label, s=30.0, m=0.5, easy_margin=False,
                      tb=16, tc=128)
    out = jax.block_until_ready(out)
    assert out.shape == (B, out_features)
    assert bool(jnp.all(jnp.isfinite(out)))

    # Tight check vs a reference that rounds the matmul inputs to bf16 exactly
    # like the kernel does (validates margin/select/indexing logic).
    ref_bf16 = aam_softmax_ref(x, weight, label, s=30.0, m=0.5,
                               easy_margin=False, matmul_dtype=jnp.bfloat16)
    assert jnp.allclose(out, ref_bf16, atol=5e-3, rtol=1e-3), \
        "mismatch vs bf16-consistent reference"

    # Loose check vs the exact f32 PyTorch-semantics reference (bounds the bf16
    # matmul error: ~1e-3 on cosine, scaled by s=30).
    ref_f32 = aam_softmax_ref(x, weight, label, s=30.0, m=0.5,
                              easy_margin=False, matmul_dtype=jnp.float32)
    assert jnp.allclose(out, ref_f32, atol=0.25, rtol=0.02), \
        "mismatch vs f32 reference"

    print("KERNEL_OK")
</pallas_src>

<mosaic_0001>
module attributes {stable_mosaic.version = 11 : i64} {
  func.func @aam_softmax_kernel(%arg0: i32, %arg1: i32, %arg2: memref<16x128xbf16, #tpu.memory_space<vmem>>, %arg3: memref<128x128xbf16, #tpu.memory_space<vmem>>, %arg4: memref<16x1xi32, #tpu.memory_space<vmem>>, %arg5: memref<16x1xf32, #tpu.memory_space<vmem>>, %arg6: memref<16x128xf32, #tpu.memory_space<vmem>>) attributes {dimension_semantics = [#tpu.dimension_semantics<parallel>, #tpu.dimension_semantics<parallel>], iteration_bounds = array<i64: 2, 4>, scalar_prefetch = 0 : i64, scratch_operands = 0 : i64, tpu.core_type = #tpu.core_type<tc>, window_params = [{transform_indices = @transform_0, window_bounds = array<i64: 16, 128>}, {transform_indices = @transform_1, window_bounds = array<i64: 128, 128>}, {transform_indices = @transform_2, window_bounds = array<i64: 16, 1>}, {transform_indices = @transform_3, window_bounds = array<i64: 16, 1>}, {transform_indices = @transform_4, window_bounds = array<i64: 16, 128>}]} {
    %c0 = arith.constant 0 : index
    %c0_0 = arith.constant 0 : index
    %0 = vector.load %arg2[%c0, %c0_0] : memref<16x128xbf16, #tpu.memory_space<vmem>>, vector<16x128xbf16>
    %c0_1 = arith.constant 0 : index
    %c0_2 = arith.constant 0 : index
    %1 = vector.load %arg3[%c0_1, %c0_2] : memref<128x128xbf16, #tpu.memory_space<vmem>>, vector<128x128xbf16>
    %cst = arith.constant dense<0.000000e+00> : vector<16x128xf32>
    %2 = tpu.matmul %0, %1, %cst {dimension_numbers = #tpu.dot_dimension_numbers<[1], [0], [0], [1], [0, 0, 1, 1], [], []>} : vector<16x128xbf16>, vector<128x128xbf16>, vector<16x128xf32> -> vector<16x128xf32>
    %3 = tpu.iota {dimensions = array<i32: 1>} : vector<16x128xi32>
    %c128_i32 = arith.constant 128 : i32
    %4 = arith.muli %arg1, %c128_i32 : i32
    %5 = vector.broadcast %4 : i32 to vector<16x128xi32>
    %6 = arith.addi %3, %5 : vector<16x128xi32>
    %c0_3 = arith.constant 0 : index
    %c0_4 = arith.constant 0 : index
    %7 = vector.load %arg4[%c0_3, %c0_4] : memref<16x1xi32, #tpu.memory_space<vmem>>, vector<16x1xi32>
    %8 = vector.broadcast %7 : vector<16x1xi32> to vector<16x128xi32>
    %9 = arith.cmpi eq, %6, %8 : vector<16x128xi32>
    %c0_5 = arith.constant 0 : index
    %c0_6 = arith.constant 0 : index
    %10 = vector.load %arg5[%c0_5, %c0_6] : memref<16x1xf32, #tpu.memory_space<vmem>>, vector<16x1xf32>
    %11 = vector.shape_cast %10 : vector<16x1xf32> to vector<16x1xf32>
    %12 = vector.broadcast %11 : vector<16x1xf32> to vector<16x128xf32>
    %13 = arith.select %9, %12, %2 : vector<16x128xi1>, vector<16x128xf32>
    %cst_7 = arith.constant 3.000000e+01 : f32
    %14 = vector.broadcast %cst_7 : f32 to vector<16x128xf32>
    %15 = arith.mulf %13, %14 : vector<16x128xf32>
    %c0_8 = arith.constant 0 : index
    %c0_9 = arith.constant 0 : index
    %16 = vector.load %arg6[%c0_8, %c0_9] : memref<16x128xf32, #tpu.memory_space<vmem>>, vector<16x128xf32>
    tpu.vector_store %arg6[%c0_8, %c0_9], %15 {strides = array<i32>} : memref<16x128xf32, #tpu.memory_space<vmem>>, vector<16x128xf32>,
    return
  }
  func.func @transform_0(%arg0: i32, %arg1: i32) -> (i32, i32) {
    %c0_i32 = arith.constant 0 : i32
    %c0_i32_0 = arith.constant 0 : i32
    return %arg0, %c0_i32 : i32, i32
  }
  func.func @transform_1(%arg0: i32, %arg1: i32) -> (i32, i32) {
    %c0_i32 = arith.constant 0 : i32
    %c0_i32_0 = arith.constant 0 : i32
    return %c0_i32, %arg1 : i32, i32
  }
  func.func @transform_2(%arg0: i32, %arg1: i32) -> (i32, i32) {
    %c0_i32 = arith.constant 0 : i32
    %c0_i32_0 = arith.constant 0 : i32
    return %arg0, %c0_i32 : i32, i32
  }
  func.func @transform_3(%arg0: i32, %arg1: i32) -> (i32, i32) {
    %c0_i32 = arith.constant 0 : i32
    %c0_i32_0 = arith.constant 0 : i32
    return %arg0, %c0_i32 : i32, i32
  }
  func.func @transform_4(%arg0: i32, %arg1: i32) -> (i32, i32) {
    %c0_i32 = arith.constant 0 : i32
    return %arg0, %arg1 : i32, i32
  }
}

</mosaic_0001>

<bundles_post_ra>
// kernel: tpu_custom_call.1
= control target key start
LH: loop header
LB: loop body
LE: loop exit
PB: predicated region body
PF: predicated region fallthrough
CT: control target
= control target key end

     0   :  { %9 = vsyncpa [#allocation3], 0  ;;  %s1113_s0 = inlined_call_operand.vmem [shape: bf16[32,128], index: 0, kind: input, shape index: {}]   ;;  %s1114_s1 = inlined_call_operand.hbm [shape: bf16[128,512], index: 1, kind: input, shape index: {}]   ;;  %s1115_s2 = inlined_call_operand.vmem [shape: s32[32,1], index: 2, kind: input, shape index: {}]   ;;  %s1116_s3 = inlined_call_operand.vmem [shape: f32[32,1], index: 3, kind: input, shape index: {}]   ;;  %s1117_s4 = inlined_call_operand.hbm [shape: f32[32,512], index: 4, kind: output, shape index: {}]  }
   0x1   :  { %11 = vsyncpa [#allocation3 + $0x1], 0 }
   0x2   :  { %12 = vsyncpa [#allocation4], 0 }
   0x3   :  { %14 = vsyncpa [#allocation4 + $0x1], 0  ;;  %s922_s15 = smov 0   ;;  %s924_s16 = smov 0  }
   0x4   :  { %s926_s17 = smov 0   ;;  %s928_s18 = smov 0  }
   0x5   :  { %s930_s19 = smov 0   ;;  %s932_s20 = smov 0  }
   0x6   :  { %s934_s21 = smov 0   ;;  %s936_s22 = smov 0  }
   0x7   :  { %s938_s23 = smov 0   ;;  %s940_s24 = smov 0  }
   0x8   :  { %s942_s25 = smov 0  }
   0x9 LB: > { %1121 = sst [smem:[#allocation8_spill]] %s884_s24  ;;  %s557_s26 = sadd.s32 4294967295, %s888_s25   ;;  %s888_s25 = sphi %s942_s25, %s20_s25   ;;  %s884_s24 = sphi %s940_s24, %s1134_s24   ;;  %s880_s23 = sphi %s938_s23, %s1142_s23   ;;  %s876_s22 = sphi %s936_s22, %s1132_s22   ;;  %s872_s21 = sphi %s934_s21, %s1141_s21   ;;  %s868_s20 = sphi %s932_s20, %s1140_s20   ;;  %s864_s19 = sphi %s930_s19, %s1139_s19   ;;  %s860_s18 = sphi %s928_s18, %s1138_s18   ;;  %s856_s17 = sphi %s926_s17, %s1137_s17   ;;  %s852_s16 = sphi %s924_s16, %s1136_s16   ;;  %s848_s15 = sphi %s922_s15, %s1135_s15  }
   0xa   : > { %s558_s27 = sadd.s32 4294967294, %s888_s25   ;;  %s29_s28 = sadd.s32 1, %s880_s23 }
   0xb   : > { %s32_s29 = sadd.s32 1, %s884_s24  ;;  %p30_p0 = scmp.ge.s32.totalorder %s29_s28, 4 }
   0xc   : > { %s65_s30 = sadd.s32 1, %s868_s20  ;;  %p72_p1 = scmp.ne.s32.totalorder %s868_s20, %s864_s19 }
   0xd   : > { %p73_p2 = scmp.eq.s32.totalorder %s888_s25, 0  ;;  %s1144_s28 = smov (%p30_p0, %s29_s28), 0 }
   0xe   : > { %1122 = sst [smem:[#allocation9_spill]] %s1144_s28  ;;  %s1146_s29 = smov (!%p30_p0, %s32_s29), %s884_s24 }
   0xf   : > { %s62_s5 = ssub.s32 %s880_s23, %s1144_s28  ;;  %p988_p3 = por %p73_p2, %p72_p1 }
  0x10   : > { %p34_p4 = scmp.ge.s32.totalorder %s1146_s29, 2  ;;  %p63_p5 = scmp.eq.s32.totalorder %s62_s5, 0 }
  0x11   : > { %p78_p6 = scmp.ne.s32.totalorder %s864_s19, %s860_s18  ;;  %p79_p7 = scmp.eq.s32.totalorder %s557_s26, 0 }
  0x12   : > { %s1148_s29 = smov (%p34_p4, %s1146_s29), 0  ;;  %s145_s11 = sadd.s32 1, %s856_s17 }
  0x13   : > { %1124 = sst [smem:[#allocation10_spill]] %s1148_s29  ;;  %p998_p8 = por %p79_p7, %p78_p6 }
  0x14   : > { %s996_s7 = scalar_select %p63_p5, %s868_s20, %s65_s30  }
  0x15   : > { %s140_s9 = ssub.s32 %s884_s24, %s1148_s29  ;;  %p155_p10 = scmp.ne.s32.totalorder %s856_s17, %s852_s16 }
  0x16   : > { %1125 = sst [smem:[#allocation11_spill]] %s996_s7  ;;  %s142_s10 = sor.u32 %s140_s9, %s62_s5 }
  0x17   : > { %p143_p9 = scmp.eq.s32.totalorder %s142_s10, 0  ;;  %p156_p11 = scmp.eq.s32.totalorder %s557_s26, 7 }
  0x18   : > { %p161_p12 = scmp.ne.s32.totalorder %s852_s16, %s848_s15  ;;  %p162_p0 = scmp.eq.s32.totalorder %s558_s27, 7 }
  0x19   : > { %s1010_s12 = scalar_select %p143_p9, %s856_s17, %s145_s11  }
  0x1a   : > { %p1012_p13 = por %p156_p11, %p155_p10  ;;  %p637_p1 = scmp.lt.s32.totalorder %s888_s25, 8 }
  0x1b   : > { %1127 = sst [smem:[#allocation12_spill]] %s1010_s12  ;;  %p1017_p2 = por %p162_p0, %p161_p12 }
  0x1c   : > { %s191_s18 = sand.u32 1, %s868_s20   ;;  %s562_s5 = sshll.u32 %s880_s23, 2 }
  0x1d   : > { %s561_s30 = sshll.u32 %s191_s18, 6  ;;  %s199_s10 = scalar_lea.hbm %s1114_s1, %s562_s5 }
  0x1e   : > { %s195_s11 = scalar_lea.vmem [#allocation2], %s561_s30  ;;  %s200_s28 = sshll.u32 %s199_s10, 4  ;;  %s201_s28 = int_to_ptr.hbm [resolvable:$true] %s200_s28 }
  0x1f   : > { %s202_s29 = sshll.u32 %s195_s11, 4  ;;  %p630_p4 = pnand %p637_p1, %p988_p3  ;;  %s203_s29 = int_to_ptr.vmem [resolvable:$true] %s202_s29 }
  0x20   : > { %s192_s27 = scalar_lea.sflag [#allocation3], %s191_s18  ;;  %s890_s24 = smov 256  }
  0x21   : > { %s891_s7 = smov 64   ;;  %s892_s12 = smov 4  }
  0x22   : > { %632 = dma.hbm_to_vmem [thread:$0]  (!%p630_p4), %s201_s28, 1024, %s203_s29, %s192_s27, %s890_s24, %s891_s7, %s892_s12  }
  0x23   : > { %p563_p5 = scmp.ge.s32.totalorder %s888_s25, 1  ;;  %p228_p6 = scmp.lt.s32.totalorder %s888_s25, 9 }
  0x25   : > { %p229_p7 = pnand %p563_p5, %p228_p6 }
  0x26   : > { %s234_s26 = sand.u32 (!%p229_p7), 1, %s864_s19  }
  0x27   : > { %232 = sbr.rel (%p229_p7) target bundleno = 219 (0xdb), region = 36  ;;  %s564_s5 = sshll.u32 (!%p229_p7), %s234_s26, 6 }
  0x28   : > { %s235_s30 = scalar_lea.sflag (!%p229_p7), [#allocation3], %s234_s26  ;;  %s1031_s9 = scalar_lea.vmem (!%p229_p7), [#allocation2], %s564_s5 }
  0x2c   : > { %839 = dma.done.wait (%p998_p8), %s235_s30, 1024  }
  0x2d   : > { %841 = vsyncadd (%p998_p8), %s235_s30, 4294966272  ;;  %s566_s24 = sshll.u32 %s876_s22, 1  ;;  %v623_v0 = vld [vmem:[%s1031_s9 + $0x38] sm:$0xff]  ;;  %v622_v1 = vld [vmem:[%s1031_s9 + $0x30] sm:$0xff]  ;;  %v893_v2 = vmov 0   ;;  %v384_v14 = vlaneseq  ;;  %s608_s5 = sshll.u32 %s872_s21, 7 }
  0x2e   : > { %p280_p3 = scmp.lt.s32.totalorder %s566_s24, 3  ;;  %370 = vmatpush.bf16.msra.mxu0 %v623_v0  ;;  %734 = vset.pattern.permute.xlu0 %v893_v2  ;;  %v621_v5 = vld [vmem:[%s1031_s9 + $0x28] sm:$0xff]  ;;  %v620_v8 = vld [vmem:[%s1031_s9 + $0x20] sm:$0xff]  ;;  %v619_v9 = vld [vmem:[%s1031_s9 + $0x18] sm:$0xff]  ;;  %v387_v16 = vstv %s608_s5  ;;  %s624_s30 = sshll.u32 %s876_s22, 3 }
  0x2f   : > { %735 = vset.pattern.permute.xlu1 %v893_v2  ;;  %v618_v10 = vld [vmem:[%s1031_s9 + $0x10] sm:$0xff]  ;;  %v617_v11 = vld [vmem:[%s1031_s9 + $0x8] sm:$0xff]  ;;  %v616_v12 = vld [vmem:[%s1031_s9] sm:$0xff]  ;;  %v385_v15 = vand.u32 127, %v384_v14  ;;  %s429_s29 = sadd.s32 %s872_s21, %s624_s30  ;;  %s786_s5 = scalar_lea.hbm %s1117_s4, 128 }
  0x30   : > { %s1150_s24 = smov (!%p280_p3, %s566_s24), 3  ;;  %s612_s9 = sshll.u32 %s429_s29, 3 }
  0x31   : > { %s569_s28 = sshll.u32 %s1150_s24, 3  ;;  %s567_s10 = sshll.u32 %s1150_s24, 2  ;;  %v388_v17 = vadd.s32 %v387_v16, %v385_v15 }
  0x32   : > { %s289_s7 = scalar_lea.vmem %s1115_s2, %s569_s28  ;;  %s295_s8 = scalar_lea.vmem %s1116_s3, %s569_s28  ;;  %371 = vmatpush.bf16.msra.mxu0 %v622_v1 }
  0x33   : > { %v389_v3 = vld [vmem:[%s289_s7] sm:$0xff]  ;;  %v390_v6 = vld [vmem:[%s289_s7 + $0x8] sm:$0xff]  ;;  %s283_s26 = scalar_lea.vmem %s1113_s0, %s567_s10  ;;  %s276_s28 = sand.u32 1, %s852_s16  }
  0x34   : > { %v399_v4 = vld [vmem:[%s295_s8] sm:$0xff]  ;;  %392 = vperm.xlu0 %734, %v389_v3   ;;  %v400_v7 = vld [vmem:[%s295_s8 + $0x8] sm:$0xff]  ;;  %s565_s24 = sshll.u32 %s276_s28, 4  ;;  %s431_s12 = scalar_lea.hbm %s1117_s4, %s612_s9 }
  0x35   : > { %403 = vperm.xlu1 %735, %v399_v4   ;;  %v615_v13 = vld [vmem:[%s283_s26] sm:$0xff]  ;;  %s278_s18 = scalar_lea.vmem [#allocation5], %s565_s24  ;;  %s434_s22 = sshll.u32 %s431_s12, 4  ;;  %s435_s22 = int_to_ptr.hbm [resolvable:$true] %s434_s22 }
  0x36   : > { %372 = vmatpush.bf16.msra.mxu0 %v621_v5  ;;  %s432_s8 = sshll.u32 %s278_s18, 4  ;;  %s418_s21 = scalar_lea.sflag [#allocation4], %s276_s28  ;;  %s433_s8 = int_to_ptr.vmem [resolvable:$true] %s432_s8 }
  0x37   : > { %s780_s10 = sshra.s32 %s435_s22, 4  ;;  %s781_s10 = int_to_ptr.hbm [resolvable:$true] %s780_s10 }
  0x38   : > { %s782_s11 = scalar_lea.hbm %s781_s10, 16  ;;  %p787_p11 = scmp.lt.s32.totalorder %s781_s10, %s1117_s4 }
  0x39   : > { %p783_p8 = scmp.ne.s32.totalorder %s781_s10, %s782_s11  ;;  %p788_p12 = scmp.lt.s32.totalorder %s786_s5, %s782_s11 }
  0x3a   : > { %373 = vmatpush.bf16.msra.mxu0 %v620_v8 }
  0x3b   : > { %p784_p9 = pnand %p783_p8, %p1012_p13  ;;  %p789_p0 = por %p788_p12, %p787_p11 }
  0x3c   : > { %395 = vperm.xlu0 %734, %v390_v6  }
  0x3d   : > { %408 = vperm.xlu1 %735, %v400_v7   ;;  %p785_p10 = pneg %p784_p9 }
  0x3e   : > { %374 = vmatpush.bf16.msra.mxu0 %v619_v9 }
  0x3f   : > { %p790_p1 = pnand %p789_p0, %p785_p10 }
  0x42   : > { %375 = vmatpush.bf16.msra.mxu0 %v618_v10 }
  0x46   : > { %376 = vmatpush.bf16.msra.mxu0 %v617_v11 }
  0x4a   : > { %377 = vmatpush.bf16.msra.mxu0 %v616_v12 }
  0x4d   : > { %378 = vmatmul.bf16.vlgmr.msra.gmra.mxu0 %v615_v13 }
  0xa6   : > { %v393_v18 = vpop.permute.xlu0 %392 }
  0xa7   : > { %vm397_vm0 = vcmp.eq.s32.totalorder %v388_v17, %v393_v18  ;;  %v404_v19 = vpop.permute.xlu1 %403 }
  0xae   : > { %v396_v23 = vpop.permute.xlu0 %395 }
  0xaf   : > { %vm398_vm1 = vcmp.eq.s32.totalorder %v388_v17, %v396_v23  ;;  %v409_v24 = vpop.permute.xlu1 %408 }
  0xca   : > { %v379_v20 = vpop.f32.mrf.mxu0 }
  0xcb   : > { %v411_v21 = vsel %vm397_vm0, %v404_v19, %v379_v20 }
  0xcc   : > { %v413_v22 = vmul.f32 30.0, %v411_v21 }
  0xce   : > { %415 = vst [vmem:[%s278_s18] sm:$0xff] %v413_v22 }
  0xd2   : > { %v381_v25 = vpop.f32.mrf.mxu0 }
  0xd3   : > { %v412_v26 = vsel %vm398_vm1, %v409_v24, %v381_v25 }
  0xd4   : > { %v414_v27 = vmul.f32 30.0, %v412_v26 }
  0xd6   : > { %416 = vst [vmem:[%s278_s18 + $0x8] sm:$0xff] %v414_v27 }
  0xd7   : > { %793 = shalt.err (!%p790_p1)
}
  0xd8   : > { %s894_s28 = smov 128   ;;  %s895_s24 = smov 512  }
  0xd9   : > { %s896_s9 = smov 8  }
  0xda   : > { %627 = dma.vmem_to_hbm [thread:$0]  (%p1012_p13), %s433_s8, 256, %s435_s22, %s418_s21, %s894_s28, %s895_s24, %s896_s9  }
  0xdb PF: > { %p638_p4 = scmp.ge.s32.totalorder %s888_s25, 2  ;;  %s449_s6 = sand.u32 1, %s848_s15  }
  0xdc   : > { %s450_s7 = scalar_lea.sflag [#allocation4], %s449_s6 }
  0xdd   : > { %p634_p5 = pnand %p638_p4, %p1017_p2 }
  0xdf   : > { %p635_p6 = pneg %p634_p5 }
  0xe1   : > { %843 = dma.done.wait (%p635_p6), %s450_s7, 256  }
  0xe2   : > { %845 = vsyncadd (%p635_p6), %s450_s7, 4294967040  ;;  %s20_s25 = sadd.s32 1, %s888_s25   ;;  %s1130_s12 = sld [smem:[#allocation12_spill]] }
  0xe3   : > { %p17_p7 = scmp.ge.s32.totalorder %s20_s25, 10   ;;  %s1131_s13 = sld [smem:[#allocation11_spill]] }
  0xe4   : > { %s1132_s22 = sld [smem:[#allocation8_spill]]  ;;  %s1135_s15 = smov %s852_s16 }
  0xe5   : > { %s1133_s8 = sld [smem:[#allocation9_spill]]  ;;  %s1136_s16 = smov %s856_s17 }
  0xe6   : > { %s1134_s24 = sld [smem:[#allocation10_spill]]  ;;  %s1138_s18 = smov %s864_s19 }
  0xe7   : > { %s1139_s19 = smov %s868_s20  ;;  %s1141_s21 = smov %s880_s23 }
  0xe8   : > { %s1137_s17 = smov %s1130_s12  ;;  %19 = sbr.rel (!%p17_p7) target bundleno = 9 (0x9), region = 90 }
  0xe9   : > { %s1140_s20 = smov %s1131_s13 }
  0xeb   : > { %s1142_s23 = smov %s1133_s8 }
  0xed   :  { %456 = vsyncpa [#allocation3], 1 }
  0xee   :  { %458 = vsyncpa [#allocation3 + $0x1], 1 }
  0xef   :  { %459 = vsyncpa [#allocation4], 1 }
  0xf0   :  { %461 = vsyncpa [#allocation4 + $0x1], 1 }

</bundles_post_ra>
